<compile_context>
chip_gen: v5e
topology: v5e:2x2
jax: 0.10.0
libtpu: 0.0.40
codegen_flags: <defaults>
</compile_context>

<pallas_src>
import math

import jax
import jax.numpy as jnp
import numpy as np
from jax.experimental import pallas as pl
from jax.experimental.pallas import tpu as pltpu

BN_EPS = 1e-5


def stats_kernel(z_ref, w_ref, sum_ref, sq_ref):
    """Pass 1: relu + block-diag matmul, accumulate per-column sum / sum-of-squares."""
    @pl.when(pl.program_id(0) == 0)
    def _():
        sum_ref[...] = jnp.zeros_like(sum_ref)
        sq_ref[...] = jnp.zeros_like(sq_ref)

    z = jnp.maximum(z_ref[...], 0.0)                                      # ReLU (VPU)
    y = jnp.dot(z, w_ref[...], preferred_element_type=jnp.float32)       # (TR, LO) on MXU
    sum_ref[...] += jnp.sum(y, axis=0, keepdims=True)                    # (1, LO)
    sq_ref[...] += jnp.sum(y * y, axis=0, keepdims=True)                 # (1, LO)


def norm_kernel(z_ref, w_ref, scale_ref, shift_ref, out_ref):
    """Pass 2: relu + block-diag matmul, apply precomputed BN scale/shift (lane-dense store)."""
    z = jnp.maximum(z_ref[...], 0.0)
    y = jnp.dot(z, w_ref[...], preferred_element_type=jnp.float32)
    out_ref[...] = y * scale_ref[...] + shift_ref[...]


def factorized_reduce(x, w0, w1, gamma_tbl, beta_tbl, prev_op_idx=(0,)):
    """
    x        : (N, C_in, H, W) float32, NCHW (PyTorch convention)
    w0       : (C1, C_in, 1, 1) conv weight, C1 = C_out // 2
    w1       : (C2, C_in, 1, 1) conv weight, C2 = C_out - C1
    gamma_tbl: (num_prev_ops, C_out) conditional-BN scale table
    beta_tbl : (num_prev_ops, C_out) conditional-BN shift table
    returns  : (N, C_out, Ho, Wo) with Ho = ceil(H/2), Wo = ceil(W/2)
    """
    N, C_in, H, W = x.shape
    C1, C2 = w0.shape[0], w1.shape[0]
    C_out = C1 + C2
    Ho, Wo = -(-H // 2), -(-W // 2)
    M = N * Ho * Wo

    # ---- lane-dense packing parameters -------------------------------------------------
    P = 128 // math.gcd(128, C_out)          # pixels packed per row -> out width multiple of 128
    KW = P * 2 * C_in                        # packed input width  (128 for C_in=4)
    LO = P * C_out                           # packed output width (multiple of 128)

    Mp_raw = -(-M // P)                      # packed rows needed
    TR = min(512, ((Mp_raw + 7) // 8) * 8)   # rows per tile (multiple of 8), ~256 KiB/tile
    Mp = ((Mp_raw + TR - 1) // TR) * TR      # packed rows after padding to a tile multiple
    num_tiles = Mp // TR
    M_pad = Mp * P

    # ---- layout glue (plain JAX, done once; no full-tensor pad, single transpose) -------
    xh = jnp.transpose(x, (0, 2, 3, 1))                       # NCHW -> NHWC
    xa = xh[:, 0::2, 0::2, :]                                 # branch A samples (N,Ho,Wo,C_in)
    xb = xh[:, 1::2, 1::2, :]                                 # branch B samples
    if xb.shape[1] != Ho or xb.shape[2] != Wo:                # zero row/col past the edge (odd H/W)
        xb = jnp.pad(xb, ((0, 0), (0, Ho - xb.shape[1]), (0, Wo - xb.shape[2]), (0, 0)))
    z = jnp.concatenate([xa, xb], axis=-1).reshape(M, 2 * C_in)
    if M_pad != M:
        z = jnp.pad(z, ((0, M_pad - M), (0, 0)))              # zero rows: inert for BN stats
    zp = z.reshape(Mp, KW)                                    # lane-dense packed input slab

    # Block-diagonal weight: one matmul == conv0(x) || conv1(shifted x) for P pixels at once.
    w0m = w0.reshape(C1, C_in).T                              # (C_in, C1)
    w1m = w1.reshape(C2, C_in).T                              # (C_in, C2)
    wpix = jnp.zeros((2 * C_in, C_out), dtype=jnp.float32)
    wpix = wpix.at[:C_in, :C1].set(w0m)
    wpix = wpix.at[C_in:, C1:].set(w1m)
    wblk = jnp.kron(jnp.eye(P, dtype=jnp.float32), wpix)      # (KW, LO)

    # ---- pass 1: global BN statistics (tiled, pipelined, persistent VMEM accumulator) ---
    sum_cols, sq_cols = pl.pallas_call(
        stats_kernel,
        out_shape=(jax.ShapeDtypeStruct((1, LO), jnp.float32),
                   jax.ShapeDtypeStruct((1, LO), jnp.float32)),
        grid=(num_tiles,),
        in_specs=[
            pl.BlockSpec((TR, KW), lambda i: (i, 0)),
            pl.BlockSpec((KW, LO), lambda i: (0, 0)),
        ],
        out_specs=[
            pl.BlockSpec((1, LO), lambda i: (0, 0)),
            pl.BlockSpec((1, LO), lambda i: (0, 0)),
        ],
        compiler_params=pltpu.CompilerParams(dimension_semantics=("arbitrary",)),
    )(zp, wblk)

    # Tiny (2 x LO) reduction + conditional-affine fold (plain JAX)
    ch_sum = sum_cols.reshape(P, C_out).sum(axis=0)
    ch_sq = sq_cols.reshape(P, C_out).sum(axis=0)
    mean = ch_sum / M                                          # divide by true pixel count
    var = jnp.maximum(ch_sq / M - mean * mean, 0.0)
    rstd = jax.lax.rsqrt(var + BN_EPS)
    gamma = gamma_tbl[prev_op_idx[0]]
    beta = beta_tbl[prev_op_idx[0]]
    scale_ch = gamma * rstd                                    # (C_out,)
    shift_ch = beta - mean * scale_ch
    scale_l = jnp.tile(scale_ch, P).reshape(1, LO)             # match packed column layout
    shift_l = jnp.tile(shift_ch, P).reshape(1, LO)

    # ---- pass 2: normalize + affine (tiled, lane-dense output, parallel grid axis) ------
    out_p = pl.pallas_call(
        norm_kernel,
        out_shape=jax.ShapeDtypeStruct((Mp, LO), jnp.float32),
        grid=(num_tiles,),
        in_specs=[
            pl.BlockSpec((TR, KW), lambda i: (i, 0)),
            pl.BlockSpec((KW, LO), lambda i: (0, 0)),
            pl.BlockSpec((1, LO), lambda i: (0, 0)),
            pl.BlockSpec((1, LO), lambda i: (0, 0)),
        ],
        out_specs=pl.BlockSpec((TR, LO), lambda i: (i, 0)),
        compiler_params=pltpu.CompilerParams(dimension_semantics=("parallel",)),
    )(zp, wblk, scale_l, shift_l)

    # ---- unpack back to NCHW -------------------------------------------------------------
    out_flat = out_p.reshape(M_pad, C_out)[:M]
    return out_flat.reshape(N, Ho, Wo, C_out).transpose(0, 3, 1, 2)


def _reference(x, w0, w1, gamma, beta):
    """Pure-JAX reference mirroring the PyTorch forward (for correctness check)."""
    xr = jnp.maximum(x, 0.0)
    a = jnp.einsum('nchw,oc->nohw', xr[:, :, ::2, ::2], w0.reshape(w0.shape[0], -1))
    xpad = jnp.pad(xr, ((0, 0), (0, 0), (0, 1), (0, 1)))
    b = jnp.einsum('nchw,oc->nohw', xpad[:, :, 1::2, 1::2], w1.reshape(w1.shape[0], -1))
    y = jnp.concatenate([a, b], axis=1)
    mean = y.mean(axis=(0, 2, 3), keepdims=True)
    var = ((y - mean) ** 2).mean(axis=(0, 2, 3), keepdims=True)
    yhat = (y - mean) / jnp.sqrt(var + BN_EPS)
    return yhat * gamma.reshape(1, -1, 1, 1) + beta.reshape(1, -1, 1, 1)


if __name__ == "__main__":
    # Module config (small): C_in=4, C_out=8, stride=2, num_prev_ops=2
    N, C_in, H, W = 2, 4, 16, 16
    C_out = 8
    C1 = C_out // 2
    C2 = C_out - C1
    num_prev_ops = 2
    prev_op_idx = (0,)

    key = jax.random.PRNGKey(0)
    kx, kw0, kw1, kg, kb = jax.random.split(key, 5)

    x = jax.random.normal(kx, (N, C_in, H, W), dtype=jnp.float32)
    w0 = jax.random.normal(kw0, (C1, C_in, 1, 1), dtype=jnp.float32) * 0.1
    w1 = jax.random.normal(kw1, (C2, C_in, 1, 1), dtype=jnp.float32) * 0.1
    gamma_tbl = 1.0 + 0.1 * jax.random.normal(kg, (num_prev_ops, C_out), dtype=jnp.float32)
    beta_tbl = 0.1 * jax.random.normal(kb, (num_prev_ops, C_out), dtype=jnp.float32)

    out = factorized_reduce(x, w0, w1, gamma_tbl, beta_tbl, prev_op_idx)
    out = jax.block_until_ready(out)

    ref = _reference(x, w0, w1, gamma_tbl[prev_op_idx[0]], beta_tbl[prev_op_idx[0]])
    np.testing.assert_allclose(np.asarray(out), np.asarray(ref), atol=1e-4, rtol=1e-4)

    print("KERNEL_OK")
</pallas_src>

<mosaic_0001>
module attributes {stable_mosaic.version = 11 : i64} {
  func.func @stats_kernel(%arg0: i32, %arg1: memref<8x128xf32, #tpu.memory_space<vmem>>, %arg2: memref<128x128xf32, #tpu.memory_space<vmem>>, %arg3: memref<1x128xf32, #tpu.memory_space<vmem>>, %arg4: memref<1x128xf32, #tpu.memory_space<vmem>>) attributes {dimension_semantics = [#tpu.dimension_semantics<arbitrary>], iteration_bounds = array<i64: 1>, scalar_prefetch = 0 : i64, scratch_operands = 0 : i64, tpu.core_type = #tpu.core_type<tc>, window_params = [{transform_indices = @transform_0, window_bounds = array<i64: 8, 128>}, {pipeline_mode = #tpu.pipeline_mode<synchronous>, transform_indices = @transform_1, window_bounds = array<i64: 128, 128>}, {pipeline_mode = #tpu.pipeline_mode<synchronous>, transform_indices = @transform_2, window_bounds = array<i64: 1, 128>}, {pipeline_mode = #tpu.pipeline_mode<synchronous>, transform_indices = @transform_3, window_bounds = array<i64: 1, 128>}]} {
    %c0_i32 = arith.constant 0 : i32
    %0 = arith.cmpi eq, %arg0, %c0_i32 : i32
    %1 = arith.extui %0 : i1 to i32
    %c0_i32_0 = arith.constant 0 : i32
    %2 = arith.cmpi ne, %1, %c0_i32_0 : i32
    scf.if %2 {
      %cst_15 = arith.constant 0.000000e+00 : f32
      %19 = vector.broadcast %cst_15 : f32 to vector<1x128xf32>
      %c0_16 = arith.constant 0 : index
      %c0_17 = arith.constant 0 : index
      %20 = vector.load %arg3[%c0_16, %c0_17] : memref<1x128xf32, #tpu.memory_space<vmem>>, vector<1x128xf32>
      tpu.vector_store %arg3[%c0_16, %c0_17], %19 {strides = array<i32>} : memref<1x128xf32, #tpu.memory_space<vmem>>, vector<1x128xf32>,
      %cst_18 = arith.constant 0.000000e+00 : f32
      %21 = vector.broadcast %cst_18 : f32 to vector<1x128xf32>
      %c0_19 = arith.constant 0 : index
      %c0_20 = arith.constant 0 : index
      %22 = vector.load %arg4[%c0_19, %c0_20] : memref<1x128xf32, #tpu.memory_space<vmem>>, vector<1x128xf32>
      tpu.vector_store %arg4[%c0_19, %c0_20], %21 {strides = array<i32>} : memref<1x128xf32, #tpu.memory_space<vmem>>, vector<1x128xf32>,
    } else {
    }
    %c0 = arith.constant 0 : index
    %c0_1 = arith.constant 0 : index
    %3 = vector.load %arg1[%c0, %c0_1] : memref<8x128xf32, #tpu.memory_space<vmem>>, vector<8x128xf32>
    %cst = arith.constant 0.000000e+00 : f32
    %4 = vector.broadcast %cst : f32 to vector<8x128xf32>
    %5 = arith.maximumf %3, %4 : vector<8x128xf32>
    %c0_2 = arith.constant 0 : index
    %c0_3 = arith.constant 0 : index
    %6 = vector.load %arg2[%c0_2, %c0_3] : memref<128x128xf32, #tpu.memory_space<vmem>>, vector<128x128xf32>
    %cst_4 = arith.constant dense<0.000000e+00> : vector<8x128xf32>
    %7 = tpu.matmul %5, %6, %cst_4 {dimension_numbers = #tpu.dot_dimension_numbers<[1], [0], [0], [1], [0, 0, 1, 1], [], []>} : vector<8x128xf32>, vector<128x128xf32>, vector<8x128xf32> -> vector<8x128xf32>
    %c0_5 = arith.constant 0 : index
    %c0_6 = arith.constant 0 : index
    %8 = vector.load %arg3[%c0_5, %c0_6] : memref<1x128xf32, #tpu.memory_space<vmem>>, vector<1x128xf32>
    %cst_7 = arith.constant dense<0.000000e+00> : vector<128xf32>
    %9 = vector.multi_reduction <add>, %7, %cst_7 [0] : vector<8x128xf32> to vector<128xf32>
    %10 = vector.shape_cast %9 : vector<128xf32> to vector<1x128xf32>
    %11 = arith.addf %8, %10 : vector<1x128xf32>
    %c0_8 = arith.constant 0 : index
    %c0_9 = arith.constant 0 : index
    %12 = vector.load %arg3[%c0_8, %c0_9] : memref<1x128xf32, #tpu.memory_space<vmem>>, vector<1x128xf32>
    tpu.vector_store %arg3[%c0_8, %c0_9], %11 {strides = array<i32>} : memref<1x128xf32, #tpu.memory_space<vmem>>, vector<1x128xf32>,
    %c0_10 = arith.constant 0 : index
    %c0_11 = arith.constant 0 : index
    %13 = vector.load %arg4[%c0_10, %c0_11] : memref<1x128xf32, #tpu.memory_space<vmem>>, vector<1x128xf32>
    %14 = arith.mulf %7, %7 : vector<8x128xf32>
    %cst_12 = arith.constant dense<0.000000e+00> : vector<128xf32>
    %15 = vector.multi_reduction <add>, %14, %cst_12 [0] : vector<8x128xf32> to vector<128xf32>
    %16 = vector.shape_cast %15 : vector<128xf32> to vector<1x128xf32>
    %17 = arith.addf %13, %16 : vector<1x128xf32>
    %c0_13 = arith.constant 0 : index
    %c0_14 = arith.constant 0 : index
    %18 = vector.load %arg4[%c0_13, %c0_14] : memref<1x128xf32, #tpu.memory_space<vmem>>, vector<1x128xf32>
    tpu.vector_store %arg4[%c0_13, %c0_14], %17 {strides = array<i32>} : memref<1x128xf32, #tpu.memory_space<vmem>>, vector<1x128xf32>,
    return
  }
  func.func @transform_0(%arg0: i32) -> (i32, i32) {
    %c0_i32 = arith.constant 0 : i32
    %c0_i32_0 = arith.constant 0 : i32
    return %arg0, %c0_i32 : i32, i32
  }
  func.func @transform_1(%arg0: i32) -> (i32, i32) {
    %c0_i32 = arith.constant 0 : i32
    %c0_i32_0 = arith.constant 0 : i32
    %c0_i32_1 = arith.constant 0 : i32
    return %c0_i32, %c0_i32_0 : i32, i32
  }
  func.func @transform_2(%arg0: i32) -> (i32, i32) {
    %c0_i32 = arith.constant 0 : i32
    %c0_i32_0 = arith.constant 0 : i32
    %c0_i32_1 = arith.constant 0 : i32
    return %c0_i32, %c0_i32_0 : i32, i32
  }
  func.func @transform_3(%arg0: i32) -> (i32, i32) {
    %c0_i32 = arith.constant 0 : i32
    %c0_i32_0 = arith.constant 0 : i32
    %c0_i32_1 = arith.constant 0 : i32
    return %c0_i32, %c0_i32_0 : i32, i32
  }
}

</mosaic_0001>

<bundles_post_ra>
// kernel: tpu_custom_call.1
= control target key start
LH: loop header
LB: loop body
LE: loop exit
PB: predicated region body
PF: predicated region fallthrough
CT: control target
= control target key end

     0   :  { %9 = vsyncpa [#allocation3], 0  ;;  %s292_s0 = inlined_call_operand.hbm [shape: f32[8,128], index: 0, kind: input, shape index: {}]   ;;  %s293_s1 = inlined_call_operand.hbm [shape: f32[128,128], index: 1, kind: input, shape index: {}]   ;;  %s294_s2 = inlined_call_operand.hbm [shape: f32[1,128], index: 2, kind: output, shape index: {0}]   ;;  %s295_s3 = inlined_call_operand.hbm [shape: f32[1,128], index: 3, kind: output, shape index: {1}]  }
   0x1   :  { %10 = vsyncpa [#allocation6], 0 }
   0x2   :  { %11 = vsyncpa [#allocation4], 0 }
   0x3   :  { %12 = vsyncpa [#allocation9], 0  ;;  %s18_s14 = sshll.u32 %s292_s0, 4  ;;  %s253_s15 = smov [#allocation2]   ;;  %s19_s14 = int_to_ptr.hbm [resolvable:$true] %s18_s14 }
   0x4   :  { %s20_s16 = sshll.u32 %s253_s15, 4  ;;  %s28_s19 = sshll.u32 %s293_s1, 4  ;;  %s21_s16 = int_to_ptr.vmem [resolvable:$true] %s20_s16  ;;  %s29_s19 = int_to_ptr.hbm [resolvable:$true] %s28_s19 }
   0x5   :  { %23 = dma.hbm_to_vmem [thread:$0]  %s19_s14, 128, %s21_s16, [#allocation3]  }
   0x6   :  { %s254_s20 = smov [#allocation5]   ;;  %s255_s22 = smov 128  }
   0x7   :  { %s30_s21 = sshll.u32 %s254_s20, 4  ;;  %s256_s23 = smov 8   ;;  %s31_s21 = int_to_ptr.vmem [resolvable:$true] %s30_s21 }
   0x8   :  { %36 = dma.hbm_to_vmem [thread:$0]  %s29_s19, 2048, %s31_s21, [#allocation6], %s255_s22, %s255_s22, %s256_s23  }
   0x9   :  { %245 = dma.done.wait [#allocation3], 128  }
   0xa   :  { %246 = vsyncadd [#allocation3], 4294967168 }
   0xb   :  { %247 = dma.done.wait [#allocation6], 2048  }
   0xc   :  { %248 = vsyncadd [#allocation6], 4294965248  ;;  %v68_v0 = vld [vmem:[#allocation5 + $0x78] sm:$0xff]  ;;  %v67_v1 = vld [vmem:[#allocation5 + $0x70] sm:$0xff]  ;;  %v257_v18 = vmov 0.0   ;;  %s258_s0 = smov [#allocation7]  }
   0xd   :  { %69 = vmatpush.msra.mxu0 %v68_v0  ;;  %v66_v2 = vld [vmem:[#allocation5 + $0x68] sm:$0xff]  ;;  %v65_v3 = vld [vmem:[#allocation5 + $0x60] sm:$0xff]  ;;  %v64_v4 = vld [vmem:[#allocation5 + $0x58] sm:$0xff]  ;;  %49 = vst [vmem:[#allocation7] sm:$0x1] %v257_v18  ;;  %s113_s1 = sshll.u32 %s258_s0, 4  ;;  %s114_s1 = int_to_ptr.vmem [resolvable:$true] %s113_s1 }
   0xe   :  { %v63_v5 = vld [vmem:[#allocation5 + $0x50] sm:$0xff]  ;;  %v62_v6 = vld [vmem:[#allocation5 + $0x48] sm:$0xff]  ;;  %v61_v7 = vld [vmem:[#allocation5 + $0x40] sm:$0xff]  ;;  %50 = vst [vmem:[#allocation8] sm:$0x1] %v257_v18  ;;  %s115_s26 = sshll.u32 %s294_s2, 4  ;;  %s116_s26 = int_to_ptr.hbm [resolvable:$true] %s115_s26 }
   0xf   :  { %70 = vmatpush.msra.mxu0 %v67_v1  ;;  %v60_v8 = vld [vmem:[#allocation5 + $0x38] sm:$0xff]  ;;  %v59_v9 = vld [vmem:[#allocation5 + $0x30] sm:$0xff]  ;;  %v58_v10 = vld [vmem:[#allocation5 + $0x28] sm:$0xff]  ;;  %s259_s27 = smov [#allocation8]   ;;  %s126_s4 = sshll.u32 %s295_s3, 4  ;;  %s127_s4 = int_to_ptr.hbm [resolvable:$true] %s126_s4 }
  0x10   :  { %v57_v11 = vld [vmem:[#allocation5 + $0x20] sm:$0xff]  ;;  %v56_v12 = vld [vmem:[#allocation5 + $0x18] sm:$0xff]  ;;  %v55_v13 = vld [vmem:[#allocation5 + $0x10] sm:$0xff]  ;;  %s124_s28 = sshll.u32 %s259_s27, 4  ;;  %s125_s28 = int_to_ptr.vmem [resolvable:$true] %s124_s28 }
  0x11   :  { %71 = vmatpush.msra.mxu0 %v66_v2  ;;  %v51_v14 = vld [vmem:[#allocation2] sm:$0xff]  ;;  %v54_v15 = vld [vmem:[#allocation5 + $0x8] sm:$0xff]  ;;  %v53_v16 = vld [vmem:[#allocation5] sm:$0xff] }
  0x12   :  { %v52_v17 = vmax.f32 %v51_v14, 0.0 }
  0x13   :  { %72 = vmatpush.msra.mxu0 %v65_v3 }
  0x14   :  { %v89_v30 = vld [vmem:[#allocation7] sm:$0x1] }
  0x15   :  { %73 = vmatpush.msra.mxu0 %v64_v4  ;;  %v98_v33 = vld [vmem:[#allocation8] sm:$0x1] }
  0x17   :  { %74 = vmatpush.msra.mxu0 %v63_v5 }
  0x19   :  { %75 = vmatpush.msra.mxu0 %v62_v6 }
  0x1b   :  { %76 = vmatpush.msra.mxu0 %v61_v7 }
  0x1d   :  { %77 = vmatpush.msra.mxu0 %v60_v8 }
  0x1f   :  { %78 = vmatpush.msra.mxu0 %v59_v9 }
  0x21   :  { %79 = vmatpush.msra.mxu0 %v58_v10 }
  0x23   :  { %80 = vmatpush.msra.mxu0 %v57_v11 }
  0x25   :  { %81 = vmatpush.msra.mxu0 %v56_v12 }
  0x27   :  { %82 = vmatpush.msra.mxu0 %v55_v13 }
  0x29   :  { %83 = vmatpush.msra.mxu0 %v54_v15 }
  0x2b   :  { %84 = vmatpush.msra.mxu0 %v53_v16 }
  0x2c   :  { %85 = vmatmul.f32.vlgmr.msra.gmra.mxu0 %v52_v17 }
  0xa9   :  { %v86_v19 = vpop.f32.mrf.mxu0 }
  0xaa   :  { %v90_v20 = vrot.slane %v86_v19, 4  ;;  %v99_v21 = vmul.f32 %v86_v19, %v86_v19 }
  0xac   :  { %v91_v22 = vadd.f32 %v90_v20, %v86_v19  ;;  %v100_v23 = vrot.slane %v99_v21, 4 }
  0xae   :  { %v92_v24 = vrot.slane %v91_v22, 2  ;;  %v101_v25 = vadd.f32 %v100_v23, %v99_v21 }
  0xb0   :  { %v93_v26 = vadd.f32 %v92_v24, %v91_v22  ;;  %v102_v27 = vrot.slane %v101_v25, 2 }
  0xb2   :  { %v94_v28 = vrot.slane %v93_v26, 1  ;;  %v103_v29 = vadd.f32 %v102_v27, %v101_v25 }
  0xb4   :  { %v95_v31 = vadd.f32 %v94_v28, %v93_v26  ;;  %v104_v32 = vrot.slane %v103_v29, 1 }
  0xb6   :  { %v105_v34 = vadd.f32 %v104_v32, %v103_v29  ;;  %v96_v35 = vadd.f32 %v95_v31, %v89_v30 }
  0xb8   :  { %97 = vst [vmem:[#allocation7] sm:$0x1] %v96_v35  ;;  %v106_v36 = vadd.f32 %v105_v34, %v98_v33 }
  0xb9   :  { %118 = dma.vmem_to_hbm [thread:$0]  %s114_s1, 16, %s116_s26, [#allocation4]  }
  0xba   :  { %107 = vst [vmem:[#allocation8] sm:$0x1] %v106_v36 }
  0xbb   :  { %129 = dma.vmem_to_hbm [thread:$0]  %s125_s28, 16, %s127_s4, [#allocation9]  }
  0xbc   :  { %249 = dma.done.wait [#allocation4], 16  }
  0xbd   :  { %250 = vsyncadd [#allocation4], 4294967280 }
  0xbe   :  { %251 = dma.done.wait [#allocation9], 16  }
  0xbf   :  { %252 = vsyncadd [#allocation9], 4294967280 }
  0xc0   :  { %138 = vsyncpa [#allocation3], 1 }
  0xc1   :  { %139 = vsyncpa [#allocation6], 1 }
  0xc2   :  { %140 = vsyncpa [#allocation4], 1 }
  0xc3   :  { %141 = vsyncpa [#allocation9], 1 }

</bundles_post_ra>
